<compile_context>
chip_gen: v7x
topology: tpu7x:2x2x1
jax: 0.10.0
libtpu: 0.0.40
codegen_flags: <defaults>
</compile_context>

<pallas_src>
import functools
from typing import NamedTuple

import jax
import jax.numpy as jnp
from jax.experimental import pallas as pl
from jax.experimental.pallas import tpu as pltpu


def _round_up(x, m):
    return ((x + m - 1) // m) * m


class DecoderDims(NamedTuple):
    E: int
    H: int
    V: int
    Vp: int
    lanes: int
    rows: int
    r_emb: int
    r_wh: int
    r_wae: int
    r_wihe: int
    r_wc: int
    r_wouth: int
    r_bh: int
    r_bc: int
    r_v: int


def preprocess_params(params):
    """One-time packing of all weights/biases into a single padded f32 slab."""
    f32 = jnp.float32
    embed = jnp.asarray(params["embed"], f32)        # (V, E)
    W_attn = jnp.asarray(params["W_attn"], f32)      # (H, 2H)
    b_attn = jnp.asarray(params["b_attn"], f32)      # (H,)
    v_attn = jnp.asarray(params["v_attn"], f32)      # (H,)
    W_ih = jnp.asarray(params["W_ih"], f32)          # (3H, E+H)
    W_hh = jnp.asarray(params["W_hh"], f32)          # (3H, H)
    b_ih = jnp.asarray(params["b_ih"], f32)          # (3H,)
    b_hh = jnp.asarray(params["b_hh"], f32)          # (3H,)
    W_out = jnp.asarray(params["W_out"], f32)        # (V, 2H)
    b_out = jnp.asarray(params["b_out"], f32)        # (V,)

    V, E = embed.shape
    H = W_hh.shape[1]
    Vp = _round_up(V, 128)
    lanes = _round_up(max(4 * H, Vp + 3 * H, E, Vp), 128)

    r_emb = 0
    r_wh = r_emb + V
    r_wae = r_wh + H
    r_wihe = r_wae + H
    r_wc = r_wihe + E
    r_wouth = r_wc + H
    r_bh = r_wouth + H
    r_bc = r_bh + 1
    r_v = r_bc + 1
    rows = _round_up(r_v + 1, 8)

    slab = jnp.zeros((rows, lanes), f32)
    # Embedding table (token id == slab row index since r_emb == 0).
    slab = slab.at[r_emb:r_emb + V, :E].set(embed)
    # [Wa_h^T | W_hh^T]: one (H, 4H) matmul against the previous hidden state.
    slab = slab.at[r_wh:r_wh + H, :H].set(W_attn[:, :H].T)
    slab = slab.at[r_wh:r_wh + H, H:4 * H].set(W_hh.T)
    # Wa_e^T: applied to encoder outputs.
    slab = slab.at[r_wae:r_wae + H, :H].set(W_attn[:, H:].T)
    # W_ih^T, embedding half.
    slab = slab.at[r_wihe:r_wihe + E, :3 * H].set(W_ih[:, :E].T)
    # [Wout_c^T | Wih_c^T]: one (H, Vp+3H) matmul against the context vector.
    slab = slab.at[r_wc:r_wc + H, :V].set(W_out[:, H:].T)
    slab = slab.at[r_wc:r_wc + H, Vp:Vp + 3 * H].set(W_ih[:, E:].T)
    # Wout_h^T (lanes V..Vp stay zero).
    slab = slab.at[r_wouth:r_wouth + H, :V].set(W_out[:, :H].T)
    # bias_h row: [b_attn | b_hh] — added straight onto the merged h-matmul.
    slab = slab.at[r_bh, :H].set(b_attn)
    slab = slab.at[r_bh, H:4 * H].set(b_hh)
    # bias_c row: [b_out (pad lanes -1e30 so log_softmax ignores them) | b_ih].
    slab = slab.at[r_bc, :Vp].set(jnp.full((Vp,), -1e30, f32).at[:V].set(b_out))
    slab = slab.at[r_bc, Vp:Vp + 3 * H].set(b_ih)
    # v_attn row.
    slab = slab.at[r_v, :H].set(v_attn)

    dims = DecoderDims(E=E, H=H, V=V, Vp=Vp, lanes=lanes, rows=rows,
                       r_emb=r_emb, r_wh=r_wh, r_wae=r_wae, r_wihe=r_wihe,
                       r_wc=r_wc, r_wouth=r_wouth, r_bh=r_bh, r_bc=r_bc, r_v=r_v)
    return slab, dims


def decoder_kernel(ids_ref, h0_ref, enc_ref, w_ref, out_ref, *, B, T, d):
    E, H, V, Vp = d.E, d.H, d.V, d.Vp
    H3, H4 = 3 * H, 4 * H
    f32 = jnp.float32

    h = h0_ref[0]                              # (B, H)   last GRU layer
    enc3 = enc_ref[...]                        # (B, T, H)
    enc2 = enc3.reshape(B * T, H)              # layout-free: T == sublane tile (8)

    # ---- static views into the single VMEM weight slab (no per-weight DMAs) ----
    W_emb = w_ref[d.r_emb:d.r_emb + V, :E]            # (V, E)
    W_h = w_ref[d.r_wh:d.r_wh + H, :H4]               # (H, 4H)  [Wa_h^T | W_hh^T]
    W_ae = w_ref[d.r_wae:d.r_wae + H, :H]             # (H, H)
    W_ihe = w_ref[d.r_wihe:d.r_wihe + E, :H3]         # (E, 3H)
    W_c = w_ref[d.r_wc:d.r_wc + H, :]                 # (H, LW)  [Wout_c^T | Wih_c^T | 0]
    W_oh = w_ref[d.r_wouth:d.r_wouth + H, :Vp]        # (H, Vp)
    bias_h = w_ref[d.r_bh:d.r_bh + 1, :H4]            # (1, 4H)  [b_attn | b_hh]
    bias_c = w_ref[d.r_bc:d.r_bc + 1, :]              # (1, LW)  [b_out(-1e30 pad) | b_ih | 0]
    v_att = w_ref[d.r_v:d.r_v + 1, :H]                # (1, H)

    # ---- embedding lookup on the idle MXU via one-hot matmul -------------------
    # TODO(synk): training-mode dropout (p=0.5, inplace) not implemented (eval id).
    idv = ids_ref[...]                                                   # (B, 1) int32
    onehot = (jax.lax.broadcasted_iota(jnp.int32, (B, V), 1) == idv).astype(f32)
    emb = jnp.dot(onehot, W_emb, preferred_element_type=f32)             # (B, E)

    # ---- attention (merged h-matmul: [e_h + b_attn | gh + b_hh] in one pass) ---
    hgh = jnp.dot(h, W_h, preferred_element_type=f32) + bias_h           # (B, 4H)
    e_e = jnp.dot(enc2, W_ae, preferred_element_type=f32)                # (B*T, H)
    energy = jnp.maximum(
        e_e.reshape(B, T, H) + hgh[:, :H][:, None, :], 0.0)             # (B, T, H)
    score = jnp.sum(energy * v_att[None, :, :], axis=2)                  # (B, T)
    m = jnp.max(score, axis=1, keepdims=True)
    p = jnp.exp(score - m)
    attn = p / jnp.sum(p, axis=1, keepdims=True)                         # exact softmax
    ctx = jnp.sum(attn[:, :, None] * enc3, axis=1)                       # (B, H)

    # ---- GRU step (merged ctx-matmul: [logits_ctx + b_out | gi_ctx + b_ih]) ----
    cslab = jnp.dot(ctx, W_c, preferred_element_type=f32) + bias_c       # (B, LW)
    gi = jnp.dot(emb, W_ihe, preferred_element_type=f32) + cslab[:, Vp:Vp + H3]
    r = jax.nn.sigmoid(gi[:, :H] + hgh[:, H:2 * H])
    z = jax.nn.sigmoid(gi[:, H:2 * H] + hgh[:, 2 * H:H3])
    n = jnp.tanh(gi[:, 2 * H:H3] + r * hgh[:, H3:H4])
    h_new = (1.0 - z) * n + z * h                                        # (B, H)

    # ---- output projection + log-softmax over padded (lane-dense) vocab -------
    logits = jnp.dot(h_new, W_oh, preferred_element_type=f32) + cslab[:, :Vp]
    s = logits - jnp.max(logits, axis=1, keepdims=True)
    logp = s - jnp.log(jnp.sum(jnp.exp(s), axis=1, keepdims=True))       # (B, Vp)

    # ---- single packed output: [ log_probs | h_new | attn | pad ] --------------
    out_ref[:, :Vp] = logp
    out_ref[:, Vp:Vp + H] = h_new
    out_ref[:, Vp + H:Vp + H + T] = attn
    # lanes beyond Vp+H+T are never read (wrapper slices them off)


def decoder_forward(input_ids, last_hidden, encoder_outputs, wslab, dims):
    """input_ids: (B,) int; last_hidden: (n_layers, B, H); encoder_outputs: (T, B, H)."""
    B = input_ids.shape[0]
    T, _, H = encoder_outputs.shape
    V, Vp = dims.V, dims.Vp
    out_lanes = _round_up(Vp + H + T, 128)

    # Tiny glue (fused under jit): 2 KB layout fix so the kernel sees encoder
    # outputs with T on the sublane axis.
    enc_bth = jnp.transpose(encoder_outputs, (1, 0, 2))                  # (B, T, H)
    ids = input_ids.reshape(B, 1).astype(jnp.int32)

    vmem = pl.BlockSpec(memory_space=pltpu.MemorySpace.VMEM)
    kernel = functools.partial(decoder_kernel, B=B, T=T, d=dims)
    out = pl.pallas_call(
        kernel,
        out_shape=jax.ShapeDtypeStruct((B, out_lanes), jnp.float32),
        in_specs=[vmem, vmem, vmem, vmem],
        out_specs=vmem,
        compiler_params=pltpu.CompilerParams(vmem_limit_bytes=4 * 1024 * 1024),
    )(ids, last_hidden, enc_bth, wslab)

    log_probs = out[:, :V]
    hidden = out[:, Vp:Vp + H][None]               # (1, B, H)  (n_layers == 1)
    attn = out[:, Vp + H:Vp + H + T][:, None, :]   # (B, 1, T)
    return log_probs, hidden, attn


def decoder_forward_ref(input_ids, last_hidden, encoder_outputs, params):
    """Pure-JAX reference with the original torch-layout parameters."""
    embedded = jnp.take(params["embed"], input_ids, axis=0)
    h = last_hidden[-1]
    enc = jnp.transpose(encoder_outputs, (1, 0, 2))
    B, T, H = enc.shape
    h_rep = jnp.broadcast_to(h[:, None, :], (B, T, H))
    cat = jnp.concatenate([h_rep, enc], axis=2)
    energy = jax.nn.relu(cat @ params["W_attn"].T + params["b_attn"])
    score = jnp.einsum("bth,h->bt", energy, params["v_attn"])
    attn = jax.nn.softmax(score, axis=1)
    ctx = jnp.einsum("bt,bth->bh", attn, enc)
    x = jnp.concatenate([embedded, ctx], axis=1)
    gi = x @ params["W_ih"].T + params["b_ih"]
    gh = h @ params["W_hh"].T + params["b_hh"]
    r = jax.nn.sigmoid(gi[:, :H] + gh[:, :H])
    z = jax.nn.sigmoid(gi[:, H:2 * H] + gh[:, H:2 * H])
    n = jnp.tanh(gi[:, 2 * H:] + r * gh[:, 2 * H:])
    h_new = (1.0 - z) * n + z * h
    logits = jnp.concatenate([h_new, ctx], axis=1) @ params["W_out"].T + params["b_out"]
    return jax.nn.log_softmax(logits, axis=1), h_new[None], attn[:, None, :]


if __name__ == "__main__":
    # Small shapes consistent with the module.
    B, T = 2, 8
    E, H, V = 32, 32, 64   # embed_size, hidden_size, output_size
    n_layers = 1

    key = jax.random.PRNGKey(0)
    ks = jax.random.split(key, 13)
    u = lambda k, shape, s: jax.random.uniform(k, shape, jnp.float32, -s, s)

    params = {
        "embed":  u(ks[0], (V, E), 1.0),
        "W_attn": u(ks[1], (H, 2 * H), 1.0 / (2 * H) ** 0.5),
        "b_attn": u(ks[2], (H,), 1.0 / (2 * H) ** 0.5),
        "v_attn": u(ks[3], (H,), 1.0 / H ** 0.5),
        "W_ih":   u(ks[4], (3 * H, E + H), 1.0 / H ** 0.5),
        "W_hh":   u(ks[5], (3 * H, H), 1.0 / H ** 0.5),
        "b_ih":   u(ks[6], (3 * H,), 1.0 / H ** 0.5),
        "b_hh":   u(ks[7], (3 * H,), 1.0 / H ** 0.5),
        "W_out":  u(ks[8], (V, 2 * H), 1.0 / (2 * H) ** 0.5),
        "b_out":  u(ks[9], (V,), 1.0 / (2 * H) ** 0.5),
    }

    input_ids = jax.random.randint(ks[10], (B,), 0, V, dtype=jnp.int32)
    last_hidden = jax.random.normal(ks[11], (n_layers, B, H), jnp.float32)
    encoder_outputs = jax.random.normal(ks[12], (T, B, H), jnp.float32)

    logp_r, hid_r, attn_r = decoder_forward_ref(
        input_ids, last_hidden, encoder_outputs, params)

    wslab, dims = preprocess_params(params)
    step = jax.jit(functools.partial(decoder_forward, dims=dims))
    logp, hid, attn = step(input_ids, last_hidden, encoder_outputs, wslab)
    jax.block_until_ready((logp, hid, attn))

    assert logp.shape == (B, V) and hid.shape == (n_layers, B, H) and attn.shape == (B, 1, T)
    assert jnp.allclose(logp, logp_r, atol=1e-3, rtol=1e-3)
    assert jnp.allclose(hid, hid_r, atol=1e-3, rtol=1e-3)
    assert jnp.allclose(attn, attn_r, atol=1e-3, rtol=1e-3)
    # Exact softmax division -> attention weights are a true probability distribution.
    assert jnp.allclose(jnp.sum(attn, axis=-1), 1.0, atol=1e-5)

    print("KERNEL_OK")
</pallas_src>

<mosaic_0001>
module attributes {stable_mosaic.version = 11 : i64} {
  func.func @decoder_kernel(%arg0: memref<2x1xi32, #tpu.memory_space<vmem>>, %arg1: memref<1x2x32xf32, #tpu.memory_space<vmem>>, %arg2: memref<2x8x32xf32, #tpu.memory_space<vmem>>, %arg3: memref<232x256xf32, #tpu.memory_space<vmem>>, %arg4: memref<2x256xf32, #tpu.memory_space<vmem>>) attributes {dimension_semantics = [], scalar_prefetch = 0 : i64, scratch_operands = 0 : i64, tpu.core_type = #tpu.core_type<tc>} {
    %c0 = arith.constant 0 : index
    %c0_0 = arith.constant 0 : index
    %c0_1 = arith.constant 0 : index
    %0 = vector.load %arg1[%c0, %c0_0, %c0_1] : memref<1x2x32xf32, #tpu.memory_space<vmem>>, vector<1x2x32xf32>
    %1 = vector.shape_cast %0 : vector<1x2x32xf32> to vector<2x32xf32>
    %c0_2 = arith.constant 0 : index
    %c0_3 = arith.constant 0 : index
    %c0_4 = arith.constant 0 : index
    %2 = vector.load %arg2[%c0_2, %c0_3, %c0_4] : memref<2x8x32xf32, #tpu.memory_space<vmem>>, vector<2x8x32xf32>
    %3 = vector.shape_cast %2 : vector<2x8x32xf32> to vector<16x32xf32>
    %c0_5 = arith.constant 0 : index
    %c0_6 = arith.constant 0 : index
    %4 = vector.load %arg3[%c0_5, %c0_6] : memref<232x256xf32, #tpu.memory_space<vmem>>, vector<64x32xf32>
    %c64 = arith.constant 64 : index
    %c0_7 = arith.constant 0 : index
    %5 = vector.load %arg3[%c64, %c0_7] : memref<232x256xf32, #tpu.memory_space<vmem>>, vector<32x128xf32>
    %c96 = arith.constant 96 : index
    %c0_8 = arith.constant 0 : index
    %6 = vector.load %arg3[%c96, %c0_8] : memref<232x256xf32, #tpu.memory_space<vmem>>, vector<32x32xf32>
    %c128 = arith.constant 128 : index
    %c0_9 = arith.constant 0 : index
    %7 = vector.load %arg3[%c128, %c0_9] : memref<232x256xf32, #tpu.memory_space<vmem>>, vector<32x96xf32>
    %c160 = arith.constant 160 : index
    %c0_10 = arith.constant 0 : index
    %8 = vector.load %arg3[%c160, %c0_10] : memref<232x256xf32, #tpu.memory_space<vmem>>, vector<32x256xf32>
    %c192 = arith.constant 192 : index
    %c0_11 = arith.constant 0 : index
    %9 = vector.load %arg3[%c192, %c0_11] : memref<232x256xf32, #tpu.memory_space<vmem>>, vector<32x128xf32>
    %c224 = arith.constant 224 : index
    %c0_12 = arith.constant 0 : index
    %10 = vector.load %arg3[%c224, %c0_12] : memref<232x256xf32, #tpu.memory_space<vmem>>, vector<1x128xf32>
    %c225 = arith.constant 225 : index
    %c0_13 = arith.constant 0 : index
    %11 = vector.load %arg3[%c225, %c0_13] : memref<232x256xf32, #tpu.memory_space<vmem>>, vector<1x256xf32>
    %c226 = arith.constant 226 : index
    %c0_14 = arith.constant 0 : index
    %12 = vector.load %arg3[%c226, %c0_14] : memref<232x256xf32, #tpu.memory_space<vmem>>, vector<1x32xf32>
    %c0_15 = arith.constant 0 : index
    %c0_16 = arith.constant 0 : index
    %13 = vector.load %arg0[%c0_15, %c0_16] : memref<2x1xi32, #tpu.memory_space<vmem>>, vector<2x1xi32>
    %14 = tpu.iota {dimensions = array<i32: 1>} : vector<2x64xi32>
    %15 = vector.broadcast %13 : vector<2x1xi32> to vector<2x64xi32>
    %16 = arith.cmpi eq, %14, %15 : vector<2x64xi32>
    %17 = arith.extui %16 : vector<2x64xi1> to vector<2x64xi32>
    %18 = arith.sitofp %17 : vector<2x64xi32> to vector<2x64xf32>
    %cst = arith.constant dense<0.000000e+00> : vector<2x32xf32>
    %19 = tpu.matmul %18, %4, %cst {dimension_numbers = #tpu.dot_dimension_numbers<[1], [0], [0], [1], [0, 0, 1, 1], [], []>} : vector<2x64xf32>, vector<64x32xf32>, vector<2x32xf32> -> vector<2x32xf32>
    %cst_17 = arith.constant dense<0.000000e+00> : vector<2x128xf32>
    %20 = tpu.matmul %1, %5, %cst_17 {dimension_numbers = #tpu.dot_dimension_numbers<[1], [0], [0], [1], [0, 0, 1, 1], [], []>} : vector<2x32xf32>, vector<32x128xf32>, vector<2x128xf32> -> vector<2x128xf32>
    %21 = vector.broadcast %10 : vector<1x128xf32> to vector<2x128xf32>
    %22 = arith.addf %20, %21 : vector<2x128xf32>
    %cst_18 = arith.constant dense<0.000000e+00> : vector<16x32xf32>
    %23 = tpu.matmul %3, %6, %cst_18 {dimension_numbers = #tpu.dot_dimension_numbers<[1], [0], [0], [1], [0, 0, 1, 1], [], []>} : vector<16x32xf32>, vector<32x32xf32>, vector<16x32xf32> -> vector<16x32xf32>
    %24 = vector.shape_cast %23 : vector<16x32xf32> to vector<2x8x32xf32>
    %25 = vector.extract_strided_slice %22 {offsets = [0, 0], sizes = [2, 32], strides = [1, 1]} : vector<2x128xf32> to vector<2x32xf32>
    %26 = vector.shape_cast %25 : vector<2x32xf32> to vector<2x1x32xf32>
    %27 = vector.broadcast %26 : vector<2x1x32xf32> to vector<2x8x32xf32>
    %28 = arith.addf %24, %27 : vector<2x8x32xf32>
    %cst_19 = arith.constant 0.000000e+00 : f32
    %29 = vector.broadcast %cst_19 : f32 to vector<2x8x32xf32>
    %30 = arith.maximumf %28, %29 : vector<2x8x32xf32>
    %31 = vector.shape_cast %12 : vector<1x32xf32> to vector<1x1x32xf32>
    %32 = vector.broadcast %31 : vector<1x1x32xf32> to vector<2x8x32xf32>
    %33 = arith.mulf %30, %32 : vector<2x8x32xf32>
    %cst_20 = arith.constant dense<0.000000e+00> : vector<2x8xf32>
    %34 = vector.multi_reduction <add>, %33, %cst_20 [2] : vector<2x8x32xf32> to vector<2x8xf32>
    %cst_21 = arith.constant dense<0xFF800000> : vector<2xf32>
    %35 = vector.multi_reduction <maximumf>, %34, %cst_21 [1] : vector<2x8xf32> to vector<2xf32>
    %36 = vector.shape_cast %35 : vector<2xf32> to vector<2x1xf32>
    %37 = vector.broadcast %36 : vector<2x1xf32> to vector<2x8xf32>
    %38 = arith.subf %34, %37 : vector<2x8xf32>
    %39 = math.exp %38 : vector<2x8xf32>
    %cst_22 = arith.constant dense<0.000000e+00> : vector<2xf32>
    %40 = vector.multi_reduction <add>, %39, %cst_22 [1] : vector<2x8xf32> to vector<2xf32>
    %41 = vector.shape_cast %40 : vector<2xf32> to vector<2x1xf32>
    %42 = vector.broadcast %41 : vector<2x1xf32> to vector<2x8xf32>
    %43 = arith.divf %39, %42 : vector<2x8xf32>
    %44 = vector.shape_cast %43 : vector<2x8xf32> to vector<2x8x1xf32>
    %45 = vector.broadcast %44 : vector<2x8x1xf32> to vector<2x8x32xf32>
    %46 = arith.mulf %45, %2 : vector<2x8x32xf32>
    %cst_23 = arith.constant dense<0.000000e+00> : vector<2x32xf32>
    %47 = vector.multi_reduction <add>, %46, %cst_23 [1] : vector<2x8x32xf32> to vector<2x32xf32>
    %cst_24 = arith.constant dense<0.000000e+00> : vector<2x256xf32>
    %48 = tpu.matmul %47, %8, %cst_24 {dimension_numbers = #tpu.dot_dimension_numbers<[1], [0], [0], [1], [0, 0, 1, 1], [], []>} : vector<2x32xf32>, vector<32x256xf32>, vector<2x256xf32> -> vector<2x256xf32>
    %49 = vector.broadcast %11 : vector<1x256xf32> to vector<2x256xf32>
    %50 = arith.addf %48, %49 : vector<2x256xf32>
    %cst_25 = arith.constant dense<0.000000e+00> : vector<2x96xf32>
    %51 = tpu.matmul %19, %7, %cst_25 {dimension_numbers = #tpu.dot_dimension_numbers<[1], [0], [0], [1], [0, 0, 1, 1], [], []>} : vector<2x32xf32>, vector<32x96xf32>, vector<2x96xf32> -> vector<2x96xf32>
    %52 = vector.extract_strided_slice %50 {offsets = [0, 128], sizes = [2, 96], strides = [1, 1]} : vector<2x256xf32> to vector<2x96xf32>
    %53 = arith.addf %51, %52 : vector<2x96xf32>
    %54 = vector.extract_strided_slice %53 {offsets = [0, 0], sizes = [2, 32], strides = [1, 1]} : vector<2x96xf32> to vector<2x32xf32>
    %55 = vector.extract_strided_slice %22 {offsets = [0, 32], sizes = [2, 32], strides = [1, 1]} : vector<2x128xf32> to vector<2x32xf32>
    %56 = arith.addf %54, %55 : vector<2x32xf32>
    %57 = arith.negf %56 : vector<2x32xf32>
    %58 = math.exp %57 : vector<2x32xf32>
    %cst_26 = arith.constant 1.000000e+00 : f32
    %59 = vector.broadcast %cst_26 : f32 to vector<2x32xf32>
    %60 = arith.addf %59, %58 : vector<2x32xf32>
    %61 = arith.divf %59, %60 : vector<2x32xf32>
    %62 = vector.extract_strided_slice %53 {offsets = [0, 32], sizes = [2, 32], strides = [1, 1]} : vector<2x96xf32> to vector<2x32xf32>
    %63 = vector.extract_strided_slice %22 {offsets = [0, 64], sizes = [2, 32], strides = [1, 1]} : vector<2x128xf32> to vector<2x32xf32>
    %64 = arith.addf %62, %63 : vector<2x32xf32>
    %65 = arith.negf %64 : vector<2x32xf32>
    %66 = math.exp %65 : vector<2x32xf32>
    %cst_27 = arith.constant 1.000000e+00 : f32
    %67 = vector.broadcast %cst_27 : f32 to vector<2x32xf32>
    %68 = arith.addf %67, %66 : vector<2x32xf32>
    %69 = arith.divf %67, %68 : vector<2x32xf32>
    %70 = vector.extract_strided_slice %53 {offsets = [0, 64], sizes = [2, 32], strides = [1, 1]} : vector<2x96xf32> to vector<2x32xf32>
    %71 = vector.extract_strided_slice %22 {offsets = [0, 96], sizes = [2, 32], strides = [1, 1]} : vector<2x128xf32> to vector<2x32xf32>
    %72 = arith.mulf %61, %71 : vector<2x32xf32>
    %73 = arith.addf %70, %72 : vector<2x32xf32>
    %74 = math.tanh %73 : vector<2x32xf32>
    %cst_28 = arith.constant 1.000000e+00 : f32
    %75 = vector.broadcast %cst_28 : f32 to vector<2x32xf32>
    %76 = arith.subf %75, %69 : vector<2x32xf32>
    %77 = arith.mulf %76, %74 : vector<2x32xf32>
    %78 = arith.mulf %69, %1 : vector<2x32xf32>
    %79 = arith.addf %77, %78 : vector<2x32xf32>
    %cst_29 = arith.constant dense<0.000000e+00> : vector<2x128xf32>
    %80 = tpu.matmul %79, %9, %cst_29 {dimension_numbers = #tpu.dot_dimension_numbers<[1], [0], [0], [1], [0, 0, 1, 1], [], []>} : vector<2x32xf32>, vector<32x128xf32>, vector<2x128xf32> -> vector<2x128xf32>
    %81 = vector.extract_strided_slice %50 {offsets = [0, 0], sizes = [2, 128], strides = [1, 1]} : vector<2x256xf32> to vector<2x128xf32>
    %82 = arith.addf %80, %81 : vector<2x128xf32>
    %cst_30 = arith.constant dense<0xFF800000> : vector<2xf32>
    %83 = vector.multi_reduction <maximumf>, %82, %cst_30 [1] : vector<2x128xf32> to vector<2xf32>
    %84 = vector.shape_cast %83 : vector<2xf32> to vector<2x1xf32>
    %85 = vector.broadcast %84 : vector<2x1xf32> to vector<2x128xf32>
    %86 = arith.subf %82, %85 : vector<2x128xf32>
    %87 = math.exp %86 : vector<2x128xf32>
    %cst_31 = arith.constant dense<0.000000e+00> : vector<2xf32>
    %88 = vector.multi_reduction <add>, %87, %cst_31 [1] : vector<2x128xf32> to vector<2xf32>
    %89 = vector.shape_cast %88 : vector<2xf32> to vector<2x1xf32>
    %90 = math.log %89 : vector<2x1xf32>
    %91 = vector.broadcast %90 : vector<2x1xf32> to vector<2x128xf32>
    %92 = arith.subf %86, %91 : vector<2x128xf32>
    %c0_32 = arith.constant 0 : index
    %c0_33 = arith.constant 0 : index
    %93 = vector.load %arg4[%c0_32, %c0_33] : memref<2x256xf32, #tpu.memory_space<vmem>>, vector<2x128xf32>
    tpu.vector_store %arg4[%c0_32, %c0_33], %92 {strides = array<i32>} : memref<2x256xf32, #tpu.memory_space<vmem>>, vector<2x128xf32>,
    %c0_34 = arith.constant 0 : index
    %c128_35 = arith.constant 128 : index
    %94 = vector.load %arg4[%c0_34, %c128_35] : memref<2x256xf32, #tpu.memory_space<vmem>>, vector<2x32xf32>
    tpu.vector_store %arg4[%c0_34, %c128_35], %79 {strides = array<i32>} : memref<2x256xf32, #tpu.memory_space<vmem>>, vector<2x32xf32>,
    %c0_36 = arith.constant 0 : index
    %c160_37 = arith.constant 160 : index
    %95 = vector.load %arg4[%c0_36, %c160_37] : memref<2x256xf32, #tpu.memory_space<vmem>>, vector<2x8xf32>
    tpu.vector_store %arg4[%c0_36, %c160_37], %43 {strides = array<i32>} : memref<2x256xf32, #tpu.memory_space<vmem>>, vector<2x8xf32>,
    return
  }
}

</mosaic_0001>

<bundles_post_ra>
// kernel: decoder_forward.1
= control target key start
LH: loop header
LB: loop body
LE: loop exit
PB: predicated region body
PF: predicated region fallthrough
CT: control target
= control target key end

     0   :  { %9 = vsyncpa [#allocation3], 0  ;;  %s1044_s15 = smov [#allocation2]   ;;  %s1212_s0 = inlined_call_operand.vmem [shape: s32[2,1], index: 0, kind: input, shape index: {}]   ;;  %s1213_s1 = inlined_call_operand.vmem [shape: f32[1,2,32], index: 1, kind: input, shape index: {}]   ;;  %s1214_s2 = inlined_call_operand.vmem [shape: f32[2,8,32], index: 2, kind: input, shape index: {}]   ;;  %s1215_s3 = inlined_call_operand.hbm [shape: f32[232,256], index: 3, kind: input, shape index: {}]   ;;  %s1216_s4 = inlined_call_operand.vmem [shape: f32[2,256], index: 4, kind: output, shape index: {}]  }
   0x1   :  { %s21_s16 = sshll.u32 %s1044_s15, 4  ;;  %s1020_s19 = scalar_lea.hbm %s1215_s3, 7424  ;;  %s22_s16 = int_to_ptr.vmem [resolvable:$true] %s21_s16 }
   0x2   :  { %p1021_p0 = scmp.ne.s32.totalorder %s1215_s3, %s1020_s19  ;;  %p1024_p1 = scmp.lt.u32.totalorder %s1020_s19, %s1215_s3 }
   0x4   :  { %p1026_p2 = pnand %p1024_p1, %p1021_p0 }
   0x6   :  { %1029 = shalt.err (!%p1026_p2)
}
   0x7   :  { %s1030_s24 = scalar_lea.vmem %s22_s16, 7424  ;;  %p1035_p4 = scmp.lt.s32.totalorder %s22_s16, %s22_s16 }
   0x8   :  { %p1031_p3 = scmp.ne.s32.totalorder %s22_s16, %s1030_s24  ;;  %p1036_p5 = scmp.lt.s32.totalorder %s1030_s24, %s1030_s24 }
   0xa   :  { %p1037_p6 = por %p1036_p5, %p1035_p4 }
   0xc   :  { %p1038_p7 = pnand %p1037_p6, %p1031_p3 }
   0xe   :  { %1041 = shalt.err (!%p1038_p7)
}
   0xf   :  { %s1045_s25 = smov 256   ;;  %s1046_s26 = smov 16  }
  0x10   :  { %27 = dma.hbm_to_vmem [thread:$0]  %s1215_s3, 7424, %s22_s16, [#allocation3], %s1045_s25, %s1045_s25, %s1046_s26  }
  0x11   :  { %1042 = dma.done.wait [#allocation3], 7424  }
  0x12   :  { %1043 = vsyncadd [#allocation3], 4294959872  ;;  %v1047_v0 = vmov 0.0|0.0   ;;  %vm1048_vm0 = vmmov 0   ;;  %v1049_v1 = vmov 0.0   ;;  %v42_v2 = vld [vmem:[#allocation2 + $0x80] sm:$0xff]  ;;  %v71_v17 = vlaneseq }
  0x13   :  { %954 = vmatprep.subr.bf16.mxu1 %v1047_v0  ;;  %906 = vmatprep.mubr.msk.f32.mxu1 %vm1048_vm0, %v1049_v1  ;;  %v43_v3 = vld [vmem:[#allocation2 + $0x90] sm:$0xff]  ;;  %v44_v4 = vld [vmem:[#allocation2 + $0xa0] sm:$0xff]  ;;  %vm153_vm1 = vcmask 261120   ;;  %v1117_v16 = vld [vmem:[%s1214_s2 + $0x8] sm:$0xff]  ;;  %v1050_v18 = vmov 1966171168  }
  0x14   :  { %942 = vmatprep.subr.bf16.mxu0 %v1047_v0  ;;  %895 = vmatprep.mubr.msk.f32.mxu0 %vm1048_vm0, %v1049_v1  ;;  %v955_v5 = vpack.c.bf16 %v43_v3, %v42_v2  ;;  %v45_v6 = vld [vmem:[#allocation2 + $0xb0] sm:$0xff]  ;;  %v46_v7 = vld [vmem:[#allocation2 + $0xc0] sm:$0xff]  ;;  %v310_v19 = vunpack.c.l.s4 %v1050_v18  ;;  %v1124_v21 = vshrl.u32 %v71_v17, 7  ;;  %v1137_v45 = vand.u32 127, %v71_v17  ;;  %s1053_s8 = smov 96   ;;  %s1054_s9 = smov 64  }
  0x15   :  { %v47_v8 = vld [vmem:[#allocation2 + $0xd0] sm:$0xff]  ;;  %v958_v9 = vpack.c.bf16 %v45_v6, %v44_v4  ;;  %v48_v11 = vld [vmem:[#allocation2 + $0xe0] sm:$0xff]  ;;  %vm363_vm2 = vcmask 1041409   ;;  %vm366_vm3 = vcmask 58368   ;;  %v1051_v54 = vmov 0  }
  0x16   :  { %956 = vmatpush3.bf16.msra.mxu1 %v955_v5  ;;  %v960_v10 = vpack.c.bf16 %v47_v8, %v46_v7  ;;  %v49_v12 = vld [vmem:[#allocation2 + $0xf0] sm:$0xff]  ;;  %v1103_v13 = vld [vmem:[%s1213_s1] sm:$0x3]  ;;  %v311_v20 = vunpack.c.0.s8 %v310_v19  ;;  %v1131_v28 = vsub.s32 0, %v1124_v21  ;;  %v69_v38 = vld [vmem:[#allocation2 + $0x1c2] ss:$0 sm:$0xff]  ;;  %v357_v47 = vsub.s32 %v1137_v45, %v1124_v21  ;;  %1000 = vset.pattern.permute.xlu1 %v1051_v54 }
  0x17   :  { %957 = vmatprep.subr.bf16.mxu1 %v1047_v0  ;;  %v964_v14 = vpack.c.bf16 %v49_v12, %v48_v11  ;;  %v1108_v15 = vld [vmem:[%s1214_s2] sm:$0xff]  ;;  %1001 = vset.pattern.permute.xlu0 %v1051_v54  ;;  %v35_v56 = vld [vmem:[#allocation2 + $0x10] sm:$0xff]  ;;  %v1150_v5 = vsub.s32 1, %v1124_v21  ;;  %vm79_vm4 = vcmask 523264   ;;  %vm715_vm6 = vcmask 1041408  }
  0x18   :  { %v66_v22 = vld [vmem:[#allocation2 + $0x1c0] ss:$0 sm:$0xff]  ;;  %v314_v23 = vsub.s32 %v311_v20, %v1124_v21  ;;  %v37_v59 = vld [vmem:[#allocation2 + $0x30] sm:$0xff]  ;;  %vm739_vm7 = vcmask 254976   ;;  %vm833_vm8 = vcmask 320768  }
  0x19   :  { %v70_v53 = vld [vmem:[%s1212_s0] sm:$0x3]  ;;  %v39_v62 = vld [vmem:[#allocation2 + $0x50] sm:$0xff]  ;;  %s1052_s0 = smov 32  }
  0x1a   :  { %959 = vmatpush3.bf16.msra.mxu1 %v958_v9  ;;  %v34_v55 = vld [vmem:[#allocation2] sm:$0xff]  ;;  %v41_v3 = vld [vmem:[#allocation2 + $0x70] sm:$0xff] }
  0x1b   :  { %961 = vmatprep.subr.bf16.mxu1 %v960_v10  ;;  %v36_v57 = vld [vmem:[#allocation2 + $0x20] sm:$0xff]  ;;  %v943_v58 = vpack.c.bf16 %v35_v56, %v34_v55  ;;  %v60_v55 = vld [vmem:[#allocation2 + $0x170] sm:$0xff] }
  0x1c   :  { %v946_v60 = vpack.c.bf16 %v37_v59, %v36_v57  ;;  %v38_v61 = vld [vmem:[#allocation2 + $0x40] sm:$0xff] }
  0x1d   :  { %907 = vmatmul.mubr.msk.f32.vlgmr.msra.gmra.mrb[0].mxu1 %vm153_vm1, %v1103_v13  ;;  %944 = vmatpush3.bf16.msra.mxu0 %v943_v58  ;;  %v949_v63 = vpack.c.bf16 %v39_v62, %v38_v61  ;;  %v40_v2 = vld [vmem:[#allocation2 + $0x60] sm:$0xff] }
  0x1e   :  { %963 = vmatpush3.bf16.msra.mxu1 %v960_v10  ;;  %917 = vmatprep.mubr.msk.f32.mxu1 %vm153_vm1, %v1108_v15  ;;  %v952_v4 = vpack.c.bf16 %v41_v3, %v40_v2  ;;  %v58_v54 = vld [vmem:[#allocation2 + $0x160] sm:$0xff] }
  0x1f   :  { %965 = vmatprep.subr.bf16.mxu1 %v964_v14  ;;  %945 = vmatprep.subr.bf16.mxu0 %v1047_v0  ;;  %v974_v56 = vpack.c.bf16 %v60_v55, %v58_v54 }
  0x21   :  { %947 = vmatpush3.bf16.msra.mxu0 %v946_v60 }
  0x22   :  { %967 = vmatpush3.bf16.msra.mxu1 %v964_v14  ;;  %948 = vmatprep.subr.bf16.mxu0 %v1047_v0 }
  0x23   :  { %976 = vmatprep.subr.bf16.mxu1 %v1047_v0 }
  0x25   :  { %918 = vmatmul.mubr.msk.f32.vlgmr.msra.gmra.mrb[2].mxu1 %vm153_vm1, %v1117_v16  ;;  %950 = vmatpush3.bf16.msra.mxu0 %v949_v63 }
  0x26   :  { %928 = vmatprep.mubr.msk.f32.mxu1 %vm1048_vm0, %v1049_v1  ;;  %951 = vmatprep.subr.bf16.mxu0 %v1047_v0 }
  0x29   :  { %953 = vmatpush3.bf16.msra.mxu0 %v952_v4 }
  0xf0   :  { %v223_v24 = vpop.f32.mrb[0].mxu1 }
  0xf1   :  { %v1127_v25 = vadd.f32 %v223_v24, %v66_v22  ;;  %v908_v26 = vpop.f32.mrb[1].mxu1 }
  0xf3   :  { %v315_v27 = vrot.slane %v1127_v25, %v314_v23 }
  0xf5   :  { %v316_v29 = vcombine.high %v315_v27, %v315_v27  ;;  %v323_v30 = vrot.slane %v315_v27, %v314_v23 }
  0xf7   :  { %v330_v31 = vrot.slane %v316_v29, %v314_v23  ;;  %v334_v32 = vrot.slane %v323_v30, %v1131_v28  ;;  %v50_v29 = vld [vmem:[#allocation2 + $0x100] sm:$0xff]  ;;  %v51_v30 = vld [vmem:[#allocation2 + $0x110] sm:$0xff] }
  0xf8   :  { %v919_v33 = vpop.f32.mrb[2].mxu1 }
  0xf9   :  { %v338_v34 = vrot.slane %v330_v31, %v1131_v28  ;;  %v299_v35 = vpop.f32.mrb[3].mxu1  ;;  %v52_v31 = vld [vmem:[#allocation2 + $0x120] sm:$0xff] }
  0xfa   :  { %v341_v36 = vadd.f32 %v334_v32, %v299_v35  ;;  %v977_v32 = vpack.c.bf16 %v51_v30, %v50_v29 }
  0xfb   :  { %v342_v37 = vadd.f32 %v919_v33, %v338_v34  ;;  %v53_v33 = vld [vmem:[#allocation2 + $0x130] sm:$0xff] }
  0xfc   :  { %v343_v39 = vmax.f32 %v341_v36, 0.0  ;;  %978 = vmatpush3.bf16.msra.mxu1 %v977_v32  ;;  %v980_v34 = vpack.c.bf16 %v53_v33, %v52_v31 }
  0xfd   :  { %v344_v40 = vmax.f32 %v342_v37, 0.0  ;;  %979 = vmatprep.subr.bf16.mxu1 %v1047_v0 }
  0xfe   :  { %v345_v41 = vmul.f32 %v343_v39, %v69_v38 }
  0xff   :  { %v346_v43 = vmul.f32 %v344_v40, %v69_v38 }
 0x100   :  { %v347_v42 = vsel %vm153_vm1, %v345_v41, 0.0  ;;  %981 = vmatpush3.bf16.msra.mxu1 %v980_v34 }
 0x101   :  { %348 = vadd.xlane.f32.xlu0 %v347_v42  ;;  %v350_v44 = vsel %vm153_vm1, %v346_v43, 0.0 }
 0x105   :  { %351 = vadd.xlane.f32.xlu0 %v350_v44  ;;  %v55_v44 = vld [vmem:[#allocation2 + $0x148] sm:$0xff] }
 0x18e   :  { %v349_v46 = vpop.xlane.xlu0 %348 }
 0x18f   :  { %v358_v49 = vrot.slane %v349_v46, %v357_v47 }
 0x192   :  { %v352_v48 = vpop.xlane.xlu0 %351 }
 0x193   :  { %v362_v50 = vrot.slane %v352_v48, %v357_v47 }
 0x195   :  { %v364_v51 = vsel %vm363_vm2, %v362_v50, %v358_v49  ;;  %v56_v49 = vld [vmem:[#allocation2 + $0x150] sm:$0xff] }
 0x196   :  { %v367_v52 = vsel %vm366_vm3, %v364_v51, -inf  ;;  %v59_v51 = vld [vmem:[#allocation2 + $0x168] sm:$0xff] }
 0x197   :  { %368 = vmax.xlane.f32.xlu1 %v367_v52  ;;  %v61_v52 = vld [vmem:[#allocation2 + $0x178] sm:$0xff] }
 0x1a8   :  { %74 = vperm.xlu1 %1000, %v70_v53   ;;  %v972_v53 = vpack.c.bf16 %v61_v52, %v59_v51  ;;  %v1055_v51 = vmov 1983009808  }
 0x1a9   :  { %v730_v52 = vunpack.c.l.s4 %v1055_v51 }
 0x224   :  { %v369_v6 = vpop.xlane.xlu1 %368 }
 0x225   :  { %v374_v7 = vrot.slane %v369_v6, %v1131_v28  ;;  %v378_v8 = vrot.slane %v369_v6, %v1150_v5 }
 0x227   :  { %v381_v9 = vsub.f32 %v349_v46, %v374_v7  ;;  %v382_v10 = vsub.f32 %v352_v48, %v378_v8  ;;  %v57_v46 = vld [vmem:[#allocation2 + $0x158] sm:$0xff]  ;;  %v54_v48 = vld [vmem:[#allocation2 + $0x140] sm:$0xff] }
 0x228   :  { %v75_v14 = vpop.permute.xlu1 %74  ;;  %v970_v50 = vpack.c.bf16 %v56_v49, %v54_v48 }
 0x229   :  { %v383_v11 = vmul.f32 1.442695, %v381_v9  ;;  %v385_v12 = vmul.f32 1.442695, %v382_v10  ;;  %vm76_vm5 = vcmp.eq.s32.totalorder %v1137_v45, %v75_v14 }
 0x22a   :  { %v840_v17 = vsel %vm76_vm5, 1.0, %v1049_v1 }
 0x22b   :  { %1002 = vpow2.f32 %v383_v11  ;;  %896 = vmatmul.mubr.msk.f32.vlgmr.msra.gmra.mrb[0].mxu0 %vm79_vm4, %v840_v17 }
 0x22c   :  { %1004 = vpow2.f32 %v385_v12  ;;  %529 = vmatprep.mubr.f32.mxu0 %v1049_v1 }
 0x235   :  { %v1003_v18 = vpop.eup %1002 }
 0x236   :  { %v1005_v19 = vpop.eup %1004  ;;  %390 = vperm.xlu0 %1001, %v1003_v18  }
 0x237   :  { %393 = vperm.xlu1 %1000, %v1005_v19  }
 0x2b5   :  { %v391_v20 = vpop.permute.xlu0 %390 }
 0x2b6   :  { %v398_v22 = vrot.slane %v391_v20, %v357_v47  ;;  %v394_v23 = vpop.permute.xlu1 %393 }
 0x2b7   :  { %v402_v24 = vrot.slane %v394_v23, %v357_v47  ;;  %v968_v47 = vpack.c.bf16 %v57_v46, %v55_v44 }
 0x2b9   :  { %v403_v26 = vsel %vm363_vm2, %v402_v24, %v398_v22  ;;  %969 = vmatprep.subr.bf16.mxu0 %v968_v47 }
 0x2ba   :  { %v405_v27 = vsel %vm366_vm3, %v403_v26, 0.0  ;;  %971 = vmatpush1.bf16.msra.mxu0 %v970_v50 }
 0x2bb   :  { %406 = vadd.xlane.f32.xlu1 %v405_v27  ;;  %973 = vmatprep.subr.bf16.mxu0 %v972_v53  ;;  %v731_v53 = vunpack.c.0.s8 %v730_v52 }
 0x2be   :  { %975 = vmatpush1.bf16.msra.mxu0 %v974_v56  ;;  %v734_v56 = vsub.s32 %v731_v53, %v1124_v21 }
 0x2bf   :  { %982 = vmatprep.subr.bf16.mxu0 %v1047_v0 }
 0x2cc   :  { %619 = vrot.lane.b32.xlu1 %v1127_v25, %s1052_s0 }
 0x2fe   :  { %v149_v35 = vpop.f32.mrb[0].mxu0 }
 0x2ff   :  { %v897_v36 = vpop.f32.mrb[1].mxu0  ;;  %929 = vmatmul.mubr.msk.f32.vlgmr.msra.gmra.mrb[4].mxu1 %vm153_vm1, %v149_v35  ;;  %v63_v35 = vld [vmem:[#allocation2 + $0x190] sm:$0xff] }
 0x300   :  { %v64_v36 = vld [vmem:[#allocation2 + $0x1a0] sm:$0xff] }
 0x348   :  { %v407_v37 = vpop.xlane.xlu1 %406 }
 0x349   :  { %v412_v38 = vrot.slane %v407_v37, %v1131_v28  ;;  %v416_v39 = vrot.slane %v407_v37, %v1150_v5 }
 0x34b   :  { %1006 = vrcp.f32 %v412_v38  ;;  %v65_v38 = vld [vmem:[#allocation2 + $0x1b0] sm:$0xff] }
 0x34c   :  { %1008 = vrcp.f32 %v416_v39  ;;  %v620_v32 = vpop.permute.xlu1 %619  ;;  %v986_v39 = vpack.c.bf16 %v65_v38, %v64_v36 }
 0x355   :  { %v1007_v40 = vpop.eup %1006 }
 0x356   :  { %v1165_v41 = vmul.f32 %v1007_v40, %v1003_v18  ;;  %v1009_v42 = vpop.eup %1008 }
 0x357   :  { %v1168_v43 = vmul.f32 %v1009_v42, %v1005_v19 }
 0x358   :  { %425 = vperm.xlu0 %1001, %v1165_v41  }
 0x359   :  { %v758_v54 = vcombine.high %v1168_v43, %v1168_v43 }
 0x35c   :  { %430 = vperm.xlu0 %1001, %v1168_v43  }
 0x360   :  { %609 = vrot.lane.b32.xlu0 %v1127_v25, %s1053_s8 }
 0x3d2   :  { %v605_v25 = vpop.f32.mrb[4].mxu1 }
 0x3d3   :  { %v930_v59 = vpop.f32.mrb[5].mxu1 }
 0x3d4   :  { %v772_v59 = vrot.slane %v758_v54, %v734_v56 }
 0x3d7   :  { %v426_v57 = vpop.permute.xlu0 %425 }
 0x3d8   :  { %v433_v58 = vmul.f32 %v426_v57, %v1108_v15 }
 0x3da   :  { %v435_v60 = vsel %vm153_vm1, %v433_v58, 0.0 }
 0x3db   :  { %v436_v61 = vrot.slane %v435_v60, 4  ;;  %v431_v62 = vpop.permute.xlu0 %430 }
 0x3dc   :  { %v434_v63 = vmul.f32 %v431_v62, %v1117_v16  ;;  %v68_v16 = vld [vmem:[#allocation2 + $0x1c1] ss:$8 sm:$0x3] }
 0x3dd   :  { %v437_v2 = vadd.f32 %v436_v61, %v435_v60  ;;  %v457_v18 = vrot.slane %v68_v16, %v1150_v5  ;;  %v62_v5 = vld [vmem:[#allocation2 + $0x180] sm:$0xff]  ;;  %v765_v60 = vrot.slane %v1168_v43, %v734_v56  ;;  %v774_v61 = vcombine.high %v772_v59, %v772_v59 }
 0x3de   :  { %v442_v3 = vsel %vm153_vm1, %v434_v63, 0.0  ;;  %v983_v37 = vpack.c.bf16 %v63_v35, %v62_v5 }
 0x3df   :  { %v438_v4 = vrot.slane %v437_v2, 2  ;;  %v443_v6 = vrot.slane %v442_v3, 4  ;;  %v610_v24 = vpop.permute.xlu0 %609  ;;  %v773_v62 = vcombine.high %v765_v60, %v765_v60 }
 0x3e1   :  { %v439_v7 = vadd.f32 %v438_v4, %v437_v2  ;;  %v444_v8 = vadd.f32 %v443_v6, %v442_v3  ;;  %v792_v63 = vcombine.low %v765_v60, %v773_v62 }
 0x3e3   :  { %v445_v9 = vrot.slane %v444_v8, 2  ;;  %v440_v10 = vrot.slane %v439_v7, 1  ;;  %v800_v3 = vrot.slane %v792_v63, %v734_v56 }
 0x3e5   :  { %v446_v11 = vadd.f32 %v445_v9, %v444_v8  ;;  %v441_v14 = vadd.f32 %v440_v10, %v439_v7 }
 0x3e7   :  { %v447_v12 = vrot.slane %v446_v11, 1 }
 0x3e9   :  { %v448_v15 = vadd.f32 %v447_v12, %v446_v11 }
 0x3eb   :  { %v462_v17 = vsel %vm363_vm2, %v448_v15, %v441_v14  ;;  %v741_v14 = vcombine.high %v1165_v41, %v1165_v41 }
 0x3ec   :  { %845 = vmatmul.mubr.msk.f32.vlgmr.msra.gmra.mrb[2].mxu0 %vm153_vm1, %v462_v17  ;;  %v748_v17 = vrot.slane %v1165_v41, %v734_v56 }
 0x3ed   :  { %939 = vmatprep.mubr.msk.f32.mxu0 %vm1048_vm0, %v1049_v1  ;;  %984 = vmatpush3.bf16.msra.mxu0 %v983_v37  ;;  %v755_v15 = vrot.slane %v741_v14, %v734_v56 }
 0x3ee   :  { %985 = vmatprep.subr.bf16.mxu0 %v1047_v0  ;;  %v453_v0 = vrot.slane %v68_v16, %v1131_v28  ;;  %v793_v28 = vcombine.low %v772_v59, %v774_v61 }
 0x3ef   :  { %v757_v16 = vcombine.high %v755_v15, %v755_v15 }
 0x3f0   :  { %v807_v2 = vrot.slane %v793_v28, %v734_v56 }
 0x3f1   :  { %987 = vmatpush3.bf16.msra.mxu0 %v986_v39 }
 0x3f2   :  { %v808_v4 = vcombine.low %v800_v3, %v807_v2 }
 0x4bf   :  { %v531_v19 = vpop.f32.mrb[2].mxu0 }
 0x4c0   :  { %v533_v20 = vpop.f32.mrb[3].mxu0 }
 0x4c1   :  { %v534_v22 = vadd.f32 %v533_v20, %v457_v18  ;;  %v756_v18 = vcombine.high %v748_v17, %v748_v17 }
 0x4c3   :  { %v606_v23 = vadd.f32 %v605_v25, %v534_v22  ;;  %v775_v20 = vcombine.low %v748_v17, %v756_v18 }
 0x4c5   :  { %v612_v26 = vadd.f32 %v610_v24, %v606_v23 }
 0x4c7   :  { %v847_v27 = vmul.f32 -1.442695, %v612_v26 }
 0x4c9   :  { %1010 = vpow2.f32 %v847_v27  ;;  %v815_v27 = vadd.s32 4294967264, %v1137_v45 }
 0x4d3   :  { %v1011_v29 = vpop.eup %1010 }
 0x4d4   :  { %v616_v30 = vadd.f32 1.0, %v1011_v29  ;;  %v818_v29 = vsub.s32 %v815_v27, %v1124_v21 }
 0x4d6   :  { %1012 = vrcp.f32 %v616_v30 }
 0x4e0   :  { %v1013_v31 = vpop.eup %1012 }
 0x4e1   :  { %v622_v33 = vmul.f32 %v1013_v31, %v620_v32  ;;  %v629_v44 = vsub.f32 1.0, %v1013_v31 }
 0x4e3   :  { %624 = vrot.lane.b32.xlu0 %v622_v33, %s1054_s9 }
 0x555   :  { %v625_v1 = vpop.permute.xlu0 %624 }
 0x556   :  { %v627_v34 = vadd.f32 %v625_v1, %v606_v23  ;;  %v783_v23 = vrot.slane %v775_v20, %v734_v56 }
 0x558   :  { %1014 = vtanh.f32 %v627_v34 }
 0x562   :  { %v1015_v40 = vpop.eup %1014 }
 0x563   :  { %631 = vrot.lane.b32.xlu0 %v1015_v40, %s1053_s8 }
 0x567   :  { %635 = vrot.lane.b32.xlu0 %v1103_v13, %s1052_s0  ;;  %v532_v13 = vadd.f32 %v531_v19, %v453_v0  ;;  %v776_v19 = vcombine.low %v755_v15, %v757_v16 }
 0x569   :  { %v790_v22 = vrot.slane %v776_v19, %v734_v56 }
 0x56b   :  { %v791_v24 = vcombine.low %v783_v23, %v790_v22 }
 0x5d5   :  { %v632_v42 = vpop.permute.xlu0 %631 }
 0x5d6   :  { %v634_v47 = vmul.f32 %v632_v42, %v629_v44 }
 0x5d9   :  { %v636_v46 = vpop.permute.xlu0 %635 }
 0x5da   :  { %v638_v48 = vmul.f32 %v1013_v31, %v636_v46 }
 0x5dc   :  { %v639_v49 = vadd.f32 %v638_v48, %v634_v47 }
 0x5de   :  { %641 = vrot.lane.b32.xlu0 %v639_v49, %s1053_s8  ;;  %v735_v6 = vrot.slane %v639_v49, %v734_v56 }
 0x650   :  { %v642_v50 = vpop.permute.xlu0 %641 }
 0x651   :  { %940 = vmatmul.mubr.msk.f32.vlgmr.msra.gmra.mrb[4].mxu0 %vm153_vm1, %v642_v50 }
 0x724   :  { %v711_v55 = vpop.f32.mrb[4].mxu0 }
 0x725   :  { %v712_v57 = vadd.f32 %v711_v55, %v532_v13  ;;  %v941_v25 = vpop.f32.mrb[5].mxu0 }
 0x727   :  { %v716_v58 = vsel %vm715_vm6, %v712_v57, -inf }
 0x728   :  { %717 = vmax.xlane.f32.xlu1 %v716_v58 }
 0x739   :  { %813 = vperm.xlu1 %1000, %v808_v4  }
 0x73d   :  { %736 = vrot.lane.b32.xlu1 %v735_v6, %s1053_s8 }
 0x7b5   :  { %v718_v7 = vpop.xlane.xlu1 %717 }
 0x7b6   :  { %v719_v8 = vsub.f32 %v712_v57, %v718_v7 }
 0x7b8   :  { %v720_v9 = vmul.f32 1.442695, %v719_v8 }
 0x7b9   :  { %v814_v10 = vpop.permute.xlu1 %813 }
 0x7ba   :  { %1016 = vpow2.f32 %v720_v9  ;;  %v823_v31 = vrot.slane %v814_v10, %v818_v29 }
 0x7bd   :  { %v737_v11 = vpop.permute.xlu1 %736 }
 0x7be   :  { %740 = vst.msk [vmem:[%s1216_s4 + $0x2] sm:$0x3] %vm739_vm7, %v737_v11 }
 0x7c4   :  { %v1017_v43 = vpop.eup %1016 }
 0x7c5   :  { %v722_v12 = vsel %vm715_vm6, %v1017_v43, 0.0 }
 0x7c6   :  { %723 = vadd.xlane.f32.xlu0 %v722_v12 }
 0x7dc   :  { %810 = vperm.xlu0 %1001, %v791_v24  }
 0x853   :  { %v724_v26 = vpop.xlane.xlu0 %723 }
 0x854   :  { %1018 = vlog2.f32 %v724_v26 }
 0x85b   :  { %v811_v30 = vpop.permute.xlu0 %810 }
 0x85c   :  { %v819_v32 = vrot.slane %v811_v30, %v818_v29 }
 0x85e   :  { %v1019_v33 = vpop.eup %1018  ;;  %v824_v41 = vsel %vm363_vm2, %v823_v31, %v819_v32 }
 0x85f   :  { %v726_v1 = vmul.f32 0.6931472, %v1019_v33  ;;  %v831_v34 = vrot.slane %v824_v41, %v734_v56 }
 0x861   :  { %v727_v5 = vsub.f32 %v719_v8, %v726_v1  ;;  %834 = vst.msk [vmem:[%s1216_s4 + $0x2] sm:$0x3] %vm833_vm8, %v831_v34 }
 0x863   :  { %728 = vst [vmem:[%s1216_s4] sm:$0x3] %v727_v5 }
 0x864   :  { %839 = vsyncpa [#allocation3], 1 }

</bundles_post_ra>
